<compile_context>
chip_gen: v5e
topology: v5e:2x2
jax: 0.10.0
libtpu: 0.0.40
codegen_flags: <defaults>
</compile_context>

<pallas_src>
import functools

import jax
import jax.numpy as jnp
from jax.experimental import pallas as pl
from jax.experimental.pallas import tpu as pltpu

H = 32   # hidden_size
V = 20   # input_size (vocab)


def encoder_seq_kernel(ids_ref,            # SMEM  (L,) int32   scalar-prefetched token ids
                       emb_ref,            # VMEM  (V, 1, H)    embedding table (resident)
                       wbig_ref,           # VMEM  (2H, 4H)     packed GRU weights (resident)
                       bbig_ref,           # VMEM  (1, 4H)      packed/fused bias (resident)
                       h0_ref,             # VMEM  (1, H)       initial hidden
                       out_ref,            # VMEM  (1, 1, H)    this step's output block
                       h_scr):             # VMEM scratch (1, H) carried hidden state
    t = pl.program_id(0)

    @pl.when(t == 0)
    def _():
        h_scr[...] = h0_ref[...]

    tok = ids_ref[t]                       # scalar token id from SMEM
    x = emb_ref[tok]                       # (1, H) embedding row (in-VMEM gather)
    h = h_scr[...]                         # (1, H)

    # Single lane-dense MXU matmul: (1, 2H) @ (2H, 4H) -> (1, 4H) = 128 lanes.
    xh = jnp.concatenate([x, h], axis=-1)                      # (1, 2H)
    g = jnp.dot(xh, wbig_ref[...],
                preferred_element_type=jnp.float32) + bbig_ref[...]

    # Column layout of g: [ r (bias-summed) | z (bias-summed) | i_n | h_n ]
    r = jax.nn.sigmoid(g[:, :H])
    z = jax.nn.sigmoid(g[:, H:2 * H])
    n = jnp.tanh(g[:, 2 * H:3 * H] + r * g[:, 3 * H:])
    h_new = (1.0 - z) * n + z * h

    h_scr[...] = h_new
    out_ref[...] = h_new.reshape(1, 1, H).astype(out_ref.dtype)


def pack_params(emb, w_ih, w_hh, b_ih, b_hh):
    """Pack torch-layout GRU params ((3H,H) weights, (3H,) biases; gate order
    r,z,n; y = x @ W.T) into the fused (2H,4H) weight + (1,4H) bias."""
    wih_t = w_ih.T          # (H, 3H)
    whh_t = w_hh.T          # (H, 3H)
    w_big = jnp.zeros((2 * H, 4 * H), jnp.float32)
    w_big = w_big.at[:H, :2 * H].set(wih_t[:, :2 * H])       # x -> r, z
    w_big = w_big.at[H:, :2 * H].set(whh_t[:, :2 * H])       # h -> r, z
    w_big = w_big.at[:H, 2 * H:3 * H].set(wih_t[:, 2 * H:])  # x -> i_n
    w_big = w_big.at[H:, 3 * H:].set(whh_t[:, 2 * H:])       # h -> h_n
    b_big = jnp.concatenate([
        b_ih[:2 * H] + b_hh[:2 * H],   # r, z biases pre-summed
        b_ih[2 * H:],                  # b_in
        b_hh[2 * H:],                  # b_hn
    ]).reshape(1, 4 * H)
    return {
        "emb": emb.reshape(V, 1, H),   # 3-D so dynamic leading-dim index is a plain offset
        "w_big": w_big,
        "b_big": b_big,
        # raw params kept only for the pure-JAX reference
        "emb2d": emb, "w_ih": w_ih, "w_hh": w_hh, "b_ih": b_ih, "b_hh": b_hh,
    }


def init_params(key):
    k_emb, k_wih, k_whh, k_bih, k_bhh = jax.random.split(key, 5)
    bound = 1.0 / jnp.sqrt(jnp.float32(H))
    emb = jax.random.normal(k_emb, (V, H), jnp.float32)               # nn.Embedding
    w_ih = jax.random.uniform(k_wih, (3 * H, H), jnp.float32, -bound, bound)
    w_hh = jax.random.uniform(k_whh, (3 * H, H), jnp.float32, -bound, bound)
    b_ih = jax.random.uniform(k_bih, (3 * H,), jnp.float32, -bound, bound)
    b_hh = jax.random.uniform(k_bhh, (3 * H,), jnp.float32, -bound, bound)
    return pack_params(emb, w_ih, w_hh, b_ih, b_hh)


@functools.partial(jax.jit, static_argnames=())
def encoder_rnn_sequence(params, token_ids, hidden0):
    """Run the EncoderRNN over a whole token sequence in ONE kernel.

    token_ids: (L,) int32;  hidden0: (1, 1, H) float32
    returns: outputs (L, 1, H), final hidden (1, 1, H)
    """
    L = token_ids.shape[0]
    h0 = hidden0.reshape(1, H).astype(jnp.float32)

    grid_spec = pltpu.PrefetchScalarGridSpec(
        num_scalar_prefetch=1,
        grid=(L,),
        in_specs=[
            pl.BlockSpec((V, 1, H), lambda t, ids: (0, 0, 0)),       # embedding table
            pl.BlockSpec((2 * H, 4 * H), lambda t, ids: (0, 0)),     # packed weights
            pl.BlockSpec((1, 4 * H), lambda t, ids: (0, 0)),         # packed bias
            pl.BlockSpec((1, H), lambda t, ids: (0, 0)),             # h0
        ],
        out_specs=pl.BlockSpec((1, 1, H), lambda t, ids: (t, 0, 0)),
        scratch_shapes=[pltpu.VMEM((1, H), jnp.float32)],            # carried hidden
    )

    cost = pl.CostEstimate(
        flops=int(L) * 2 * (2 * H) * (4 * H),
        transcendentals=int(L) * 3 * H,
        bytes_accessed=(V * H + 2 * H * 4 * H + 4 * H + H + L * H) * 4 + int(L) * 4,
    )

    outputs = pl.pallas_call(
        encoder_seq_kernel,
        out_shape=jax.ShapeDtypeStruct((L, 1, H), jnp.float32),
        grid_spec=grid_spec,
        compiler_params=pltpu.CompilerParams(
            dimension_semantics=("arbitrary",)),      # carried state -> sequential
        cost_estimate=cost,
    )(token_ids.astype(jnp.int32), params["emb"], params["w_big"],
      params["b_big"], h0)

    hidden = outputs[-1].reshape(1, 1, H)             # final hidden == last output row
    return outputs, hidden


def encoder_rnn_forward(params, token_id, hidden):
    """Equivalent of EncoderRNN.forward(input, hidden): one token, one step."""
    ids = jnp.ravel(jnp.asarray(token_id)).astype(jnp.int32)[:1]
    outputs, h_final = encoder_rnn_sequence(params, ids, hidden)
    return outputs.reshape(1, 1, H), h_final


def _reference_forward_seq(params, token_ids, hidden0):
    """Pure-JAX reference with torch.nn.GRU semantics (gate order r, z, n)."""
    w_ih, w_hh = params["w_ih"], params["w_hh"]
    b_ih, b_hh = params["b_ih"], params["b_hh"]
    emb = params["emb2d"]

    def step(h, tok):
        x = emb[tok].reshape(1, H)
        gi = x @ w_ih.T + b_ih
        gh = h @ w_hh.T + b_hh
        r = jax.nn.sigmoid(gi[:, :H] + gh[:, :H])
        z = jax.nn.sigmoid(gi[:, H:2 * H] + gh[:, H:2 * H])
        n = jnp.tanh(gi[:, 2 * H:] + r * gh[:, 2 * H:])
        h_new = (1.0 - z) * n + z * h
        return h_new, h_new

    h_final, outs = jax.lax.scan(step, hidden0.reshape(1, H), token_ids)
    return outs.reshape(-1, 1, H), h_final.reshape(1, 1, H)


if __name__ == "__main__":
    key = jax.random.PRNGKey(0)
    k_params, k_tokens = jax.random.split(key)
    params = init_params(k_params)

    # Fused sequence path (seq_len = 8).
    L = 8
    token_ids = jax.random.randint(k_tokens, (L,), 0, V, dtype=jnp.int32)
    hidden0 = jnp.zeros((1, 1, H), dtype=jnp.float32)   # initHidden()

    outs, h_final = encoder_rnn_sequence(params, token_ids, hidden0)
    outs = jax.block_until_ready(outs)
    h_final = jax.block_until_ready(h_final)

    ref_outs, ref_h = _reference_forward_seq(params, token_ids, hidden0)
    assert outs.shape == (L, 1, H) and h_final.shape == (1, 1, H)
    assert jnp.allclose(outs, ref_outs, atol=1e-5, rtol=1e-5)
    assert jnp.allclose(h_final, ref_h, atol=1e-5, rtol=1e-5)

    # Single-step path, matching EncoderRNN.forward(input, hidden) exactly.
    tok = jnp.array([3], dtype=jnp.int32)
    out1, h1 = encoder_rnn_forward(params, tok, hidden0)
    out1 = jax.block_until_ready(out1)
    ref_out1, ref_h1 = _reference_forward_seq(params, tok, hidden0)
    assert out1.shape == (1, 1, H) and h1.shape == (1, 1, H)
    assert jnp.allclose(out1, ref_out1, atol=1e-5, rtol=1e-5)
    assert jnp.allclose(h1, ref_h1, atol=1e-5, rtol=1e-5)

    print("KERNEL_OK")
</pallas_src>

<mosaic_0001>
module attributes {stable_mosaic.version = 11 : i64} {
  func.func @encoder_seq_kernel(%arg0: i32, %arg1: memref<8xi32, #tpu.memory_space<smem>>, %arg2: memref<20x1x32xf32, #tpu.memory_space<vmem>>, %arg3: memref<64x128xf32, #tpu.memory_space<vmem>>, %arg4: memref<1x128xf32, #tpu.memory_space<vmem>>, %arg5: memref<1x32xf32, #tpu.memory_space<vmem>>, %arg6: memref<1x1x32xf32, #tpu.memory_space<vmem>>, %arg7: memref<1x32xf32, #tpu.memory_space<vmem>>) attributes {dimension_semantics = [#tpu.dimension_semantics<arbitrary>], iteration_bounds = array<i64: 8>, scalar_prefetch = 1 : i64, scratch_operands = 1 : i64, tpu.core_type = #tpu.core_type<tc>, window_params = [{pipeline_mode = #tpu.pipeline_mode<synchronous>, transform_indices = @transform_0, window_bounds = array<i64: 20, 1, 32>}, {pipeline_mode = #tpu.pipeline_mode<synchronous>, transform_indices = @transform_1, window_bounds = array<i64: 64, 128>}, {pipeline_mode = #tpu.pipeline_mode<synchronous>, transform_indices = @transform_2, window_bounds = array<i64: 1, 128>}, {pipeline_mode = #tpu.pipeline_mode<synchronous>, transform_indices = @transform_3, window_bounds = array<i64: 1, 32>}, {transform_indices = @transform_4, window_bounds = array<i64: 1, 1, 32>}]} {
    %c0_i32 = arith.constant 0 : i32
    %0 = arith.cmpi eq, %arg0, %c0_i32 : i32
    %1 = arith.extui %0 : i1 to i32
    %c0_i32_0 = arith.constant 0 : i32
    %2 = arith.cmpi ne, %1, %c0_i32_0 : i32
    scf.if %2 {
      %c0_16 = arith.constant 0 : index
      %c0_17 = arith.constant 0 : index
      %39 = vector.load %arg5[%c0_16, %c0_17] : memref<1x32xf32, #tpu.memory_space<vmem>>, vector<1x32xf32>
      %c0_18 = arith.constant 0 : index
      %c0_19 = arith.constant 0 : index
      %40 = vector.load %arg7[%c0_18, %c0_19] : memref<1x32xf32, #tpu.memory_space<vmem>>, vector<1x32xf32>
      tpu.vector_store %arg7[%c0_18, %c0_19], %39 {strides = array<i32>} : memref<1x32xf32, #tpu.memory_space<vmem>>, vector<1x32xf32>,
    } else {
    }
    %3 = arith.index_cast %arg0 : i32 to index
    %4 = memref.load %arg1[%3] : memref<8xi32, #tpu.memory_space<smem>>
    %5 = arith.index_cast %4 : i32 to index
    %c0 = arith.constant 0 : index
    %c0_1 = arith.constant 0 : index
    %6 = vector.load %arg2[%5, %c0, %c0_1] : memref<20x1x32xf32, #tpu.memory_space<vmem>>, vector<1x1x32xf32>
    %7 = vector.shape_cast %6 : vector<1x1x32xf32> to vector<1x32xf32>
    %c0_2 = arith.constant 0 : index
    %c0_3 = arith.constant 0 : index
    %8 = vector.load %arg7[%c0_2, %c0_3] : memref<1x32xf32, #tpu.memory_space<vmem>>, vector<1x32xf32>
    %9 = tpu.concatenate %7, %8 in 1 : vector<1x32xf32>, vector<1x32xf32> -> vector<1x64xf32>
    %c0_4 = arith.constant 0 : index
    %c0_5 = arith.constant 0 : index
    %10 = vector.load %arg3[%c0_4, %c0_5] : memref<64x128xf32, #tpu.memory_space<vmem>>, vector<64x128xf32>
    %cst = arith.constant dense<0.000000e+00> : vector<1x128xf32>
    %11 = tpu.matmul %9, %10, %cst {dimension_numbers = #tpu.dot_dimension_numbers<[1], [0], [0], [1], [0, 0, 1, 1], [], []>} : vector<1x64xf32>, vector<64x128xf32>, vector<1x128xf32> -> vector<1x128xf32>
    %c0_6 = arith.constant 0 : index
    %c0_7 = arith.constant 0 : index
    %12 = vector.load %arg4[%c0_6, %c0_7] : memref<1x128xf32, #tpu.memory_space<vmem>>, vector<1x128xf32>
    %13 = arith.addf %11, %12 : vector<1x128xf32>
    %14 = vector.extract_strided_slice %13 {offsets = [0, 0], sizes = [1, 32], strides = [1, 1]} : vector<1x128xf32> to vector<1x32xf32>
    %15 = arith.negf %14 : vector<1x32xf32>
    %16 = math.exp %15 : vector<1x32xf32>
    %cst_8 = arith.constant 1.000000e+00 : f32
    %17 = vector.broadcast %cst_8 : f32 to vector<1x32xf32>
    %18 = arith.addf %17, %16 : vector<1x32xf32>
    %19 = arith.divf %17, %18 : vector<1x32xf32>
    %20 = vector.extract_strided_slice %13 {offsets = [0, 32], sizes = [1, 32], strides = [1, 1]} : vector<1x128xf32> to vector<1x32xf32>
    %21 = arith.negf %20 : vector<1x32xf32>
    %22 = math.exp %21 : vector<1x32xf32>
    %cst_9 = arith.constant 1.000000e+00 : f32
    %23 = vector.broadcast %cst_9 : f32 to vector<1x32xf32>
    %24 = arith.addf %23, %22 : vector<1x32xf32>
    %25 = arith.divf %23, %24 : vector<1x32xf32>
    %26 = vector.extract_strided_slice %13 {offsets = [0, 64], sizes = [1, 32], strides = [1, 1]} : vector<1x128xf32> to vector<1x32xf32>
    %27 = vector.extract_strided_slice %13 {offsets = [0, 96], sizes = [1, 32], strides = [1, 1]} : vector<1x128xf32> to vector<1x32xf32>
    %28 = arith.mulf %19, %27 : vector<1x32xf32>
    %29 = arith.addf %26, %28 : vector<1x32xf32>
    %30 = math.tanh %29 : vector<1x32xf32>
    %cst_10 = arith.constant 1.000000e+00 : f32
    %31 = vector.broadcast %cst_10 : f32 to vector<1x32xf32>
    %32 = arith.subf %31, %25 : vector<1x32xf32>
    %33 = arith.mulf %32, %30 : vector<1x32xf32>
    %34 = arith.mulf %25, %8 : vector<1x32xf32>
    %35 = arith.addf %33, %34 : vector<1x32xf32>
    %c0_11 = arith.constant 0 : index
    %c0_12 = arith.constant 0 : index
    %36 = vector.load %arg7[%c0_11, %c0_12] : memref<1x32xf32, #tpu.memory_space<vmem>>, vector<1x32xf32>
    tpu.vector_store %arg7[%c0_11, %c0_12], %35 {strides = array<i32>} : memref<1x32xf32, #tpu.memory_space<vmem>>, vector<1x32xf32>,
    %37 = vector.shape_cast %35 : vector<1x32xf32> to vector<1x1x32xf32>
    %c0_13 = arith.constant 0 : index
    %c0_14 = arith.constant 0 : index
    %c0_15 = arith.constant 0 : index
    %38 = vector.load %arg6[%c0_13, %c0_14, %c0_15] : memref<1x1x32xf32, #tpu.memory_space<vmem>>, vector<1x1x32xf32>
    tpu.vector_store %arg6[%c0_13, %c0_14, %c0_15], %37 {strides = array<i32>} : memref<1x1x32xf32, #tpu.memory_space<vmem>>, vector<1x1x32xf32>,
    return
  }
  func.func @transform_0(%arg0: i32, %arg1: memref<8xi32, #tpu.memory_space<smem>>) -> (i32, i32, i32) {
    %c0_i32 = arith.constant 0 : i32
    %c0_i32_0 = arith.constant 0 : i32
    %c0_i32_1 = arith.constant 0 : i32
    %c0_i32_2 = arith.constant 0 : i32
    return %c0_i32, %c0_i32_0, %c0_i32_1 : i32, i32, i32
  }
  func.func @transform_1(%arg0: i32, %arg1: memref<8xi32, #tpu.memory_space<smem>>) -> (i32, i32) {
    %c0_i32 = arith.constant 0 : i32
    %c0_i32_0 = arith.constant 0 : i32
    %c0_i32_1 = arith.constant 0 : i32
    return %c0_i32, %c0_i32_0 : i32, i32
  }
  func.func @transform_2(%arg0: i32, %arg1: memref<8xi32, #tpu.memory_space<smem>>) -> (i32, i32) {
    %c0_i32 = arith.constant 0 : i32
    %c0_i32_0 = arith.constant 0 : i32
    %c0_i32_1 = arith.constant 0 : i32
    return %c0_i32, %c0_i32_0 : i32, i32
  }
  func.func @transform_3(%arg0: i32, %arg1: memref<8xi32, #tpu.memory_space<smem>>) -> (i32, i32) {
    %c0_i32 = arith.constant 0 : i32
    %c0_i32_0 = arith.constant 0 : i32
    %c0_i32_1 = arith.constant 0 : i32
    return %c0_i32, %c0_i32_0 : i32, i32
  }
  func.func @transform_4(%arg0: i32, %arg1: memref<8xi32, #tpu.memory_space<smem>>) -> (i32, i32, i32) {
    %c0_i32 = arith.constant 0 : i32
    %c0_i32_0 = arith.constant 0 : i32
    %c0_i32_1 = arith.constant 0 : i32
    return %arg0, %c0_i32, %c0_i32_0 : i32, i32, i32
  }
}

</mosaic_0001>

<bundles_post_ra>
// kernel: encoder_rnn_sequence.1
= control target key start
LH: loop header
LB: loop body
LE: loop exit
PB: predicated region body
PF: predicated region fallthrough
CT: control target
= control target key end

     0   :  { %s583_s21 = smov [#allocation4]   ;;  %s698_s0 = inlined_call_operand.vmem [shape: s32[8], index: 0, kind: input, shape index: {}]   ;;  %s699_s1 = inlined_call_operand.hbm [shape: f32[20,1,32], index: 1, kind: input, shape index: {}]   ;;  %s700_s2 = inlined_call_operand.hbm [shape: f32[64,128], index: 2, kind: input, shape index: {}]   ;;  %s701_s3 = inlined_call_operand.hbm [shape: f32[1,128], index: 3, kind: input, shape index: {}]   ;;  %s702_s4 = inlined_call_operand.vmem [shape: f32[1,32], index: 4, kind: input, shape index: {}]   ;;  %s703_s5 = inlined_call_operand.vmem [shape: f32[8,1,32], index: 5, kind: output, shape index: {}]  }
   0x1   :  { %s11_s20 = sshll.u32 %s698_s0, 4  ;;  %s12_s20 = int_to_ptr.vmem [resolvable:$true] %s11_s20 }
   0x2   :  { %14 = dma.vmem_to_smem %s12_s20, 16, %s583_s21, [#allocation3] }
   0x3   :  { %569 = dma.done.wait [#allocation3], 16 }
   0x4   :  { %570 = vsyncadd [#allocation3], 4294967280 }
   0x5   :  { %17 = sfence }
   0x6   :  { %18 = vsyncpa [#allocation6], 0 }
   0x7   :  { %19 = vsyncpa [#allocation8], 0  ;;  %s627_s22 = smov 0  }
   0x8 LB: > { %s165_s0 = sshll.u32 %s700_s2, 4  ;;  %s636_s25 = sadd.s32 4294967295, %s581_s22   ;;  %s581_s22 = sphi %s627_s22, %s25_s22   ;;  %s166_s0 = int_to_ptr.hbm [resolvable:$true] %s165_s0 }
   0x9   : > { %p396_p0 = scmp.ge.s32.totalorder %s581_s22, 1  ;;  %p140_p1 = scmp.lt.s32.totalorder %s581_s22, 9 }
   0xa   : > { %p397_p2 = scmp.ne.s32.totalorder %s636_s25, 0  ;;  %p431_p3 = scmp.eq.s32.totalorder %s636_s25, 0 }
   0xb   : > { %p642_p4 = pnand %p396_p0, %p140_p1  ;;  %s584_s27 = smov [#allocation7]  }
   0xc   : > { %s167_s28 = sshll.u32 %s584_s27, 4  ;;  %s151_s6 = sshll.u32 %s699_s1, 4  ;;  %s168_s28 = int_to_ptr.vmem [resolvable:$true] %s167_s28  ;;  %s152_s6 = int_to_ptr.hbm [resolvable:$true] %s151_s6 }
   0xd   : > { %p421_p5 = pneg %p642_p4  ;;  %s585_s8 = smov [#allocation5]  }
   0xe   : > { %s153_s9 = sshll.u32 %s585_s8, 4  ;;  %s586_s10 = smov 128   ;;  %s154_s9 = int_to_ptr.vmem [resolvable:$true] %s153_s9 }
   0xf   : > { %p653_p6 = pnand %p431_p3, %p421_p5  ;;  %s587_s11 = smov 8  }
  0x10   : > { %s180_s14 = sshll.u32 %s701_s3, 4  ;;  %s588_s15 = smov 16   ;;  %s181_s14 = int_to_ptr.hbm [resolvable:$true] %s180_s14 }
  0x11   : > { %427 = dma.hbm_to_vmem [thread:$0]  (!%p653_p6), %s166_s0, 1024, %s168_s28, [#allocation8], %s586_s10, %s586_s10, %s587_s11  }
  0x12   : > { %s589_s16 = smov 1   ;;  %s590_s17 = smov [#allocation9]  }
  0x13   : > { %424 = dma.hbm_to_vmem [thread:$0]  (!%p653_p6), %s152_s6, 320, %s154_s9, [#allocation6], %s588_s15, %s588_s15, %s589_s16  }
  0x14   : > { %s182_s18 = sshll.u32 %s590_s17, 4  ;;  %198 = sbr.rel (%p642_p4) target bundleno = 739 (0x2e3), region = 36  ;;  %s183_s18 = int_to_ptr.vmem [resolvable:$true] %s182_s18 }
  0x15   : > { %430 = dma.hbm_to_vmem [thread:$0]  (!%p653_p6), %s181_s14, 16, %s183_s18, [#allocation8]  }
  0x19   : > { %572 = dma.done.wait (%p431_p3), [#allocation6], 320  }
  0x1a   : > { %574 = vsyncadd (%p431_p3), [#allocation6], 4294966976 }
  0x1b   : > { %576 = dma.done.wait (%p431_p3), [#allocation8], 1040  }
  0x1c   : > { %578 = vsyncadd (%p431_p3), [#allocation8], 4294966256  ;;  %p228_p7 = scmp.lt.s32.totalorder %s636_s25, 7  ;;  %234 = sbr.rel (%p397_p2) target bundleno = 35 (0x23), region = 52 }
  0x1e   : > { %s678_s19 = scalar_select %p228_p7, %s636_s25, 7 }
  0x20   : > { %s230_s23 = scalar_lea.vmem %s703_s5, %s678_s19 }
  0x21   : > { %v235_v0 = vld [vmem:[%s702_s4] sm:$0x1]  ;;  %vm236_vm0 = vcmask 253952  }
  0x22   : > { %237 = vst.msk [vmem:[#allocation2] sm:$0x1] %vm236_vm0, %v235_v0 }
  0x23 PF: > { %v256_v2 = vld [vmem:[#allocation7 + $0x38] sm:$0xff]  ;;  %v255_v3 = vld [vmem:[#allocation7 + $0x30] sm:$0xff]  ;;  %s591_s26 = smov 32   ;;  %v254_v4 = vld [vmem:[#allocation7 + $0x28] sm:$0xff]  ;;  %s238_s27 = sld [smem:[#allocation4 + %s636_s25]]  ;;  %vm247_vm1 = vcmask 261120  }
  0x24   : > { %270 = vmatpush.msra.mxu0 %v256_v2  ;;  %v253_v5 = vld [vmem:[#allocation7 + $0x20] sm:$0xff]  ;;  %v252_v6 = vld [vmem:[#allocation7 + $0x18] sm:$0xff]  ;;  %v251_v7 = vld [vmem:[#allocation7 + $0x10] sm:$0xff]  ;;  %vm258_vm2 = vcmask 523264   ;;  %s592_s25 = smov 64   ;;  %s593_s29 = smov 96  }
  0x25   : > { %v250_v8 = vld [vmem:[#allocation7 + $0x8] sm:$0xff]  ;;  %v249_v9 = vld [vmem:[#allocation7] sm:$0xff]  ;;  %vm324_vm7 = vcmask 253952  }
  0x26   : > { %271 = vmatpush.msra.mxu0 %v255_v3  ;;  %v257_v13 = vld [vmem:[#allocation9] sm:$0x1] }
  0x28   : > { %272 = vmatpush.msra.mxu0 %v254_v4 }
  0x29   : > { %v456_v1 = vld [vmem:[#allocation2] ss:$0 sm:$0xff]  ;;  %s239_s28 = scalar_lea.vmem [#allocation5], %s238_s27 }
  0x2a   : > { %244 = vrot.lane.b32.xlu0 %v456_v1, %s591_s26  ;;  %273 = vmatpush.msra.mxu0 %v253_v5  ;;  %v240_v10 = vld [vmem:[%s239_s28] sm:$0x1] }
  0x2c   : > { %274 = vmatpush.msra.mxu0 %v252_v6 }
  0x2e   : > { %275 = vmatpush.msra.mxu0 %v251_v7 }
  0x30   : > { %276 = vmatpush.msra.mxu0 %v250_v8 }
  0x32   : > { %277 = vmatpush.msra.mxu0 %v249_v9 }
  0x9c   : > { %v245_v11 = vpop.permute.xlu0 %244 }
  0x9d   : > { %v248_v12 = vsel %vm247_vm1, %v240_v10, %v245_v11 }
  0x9e   : > { %405 = vmatmul.msk.f32.vlgmr.msra.gmra.mxu0 %vm258_vm2, %v248_v12 }
 0x11b   : > { %v279_v14 = vpop.f32.mrf.mxu0 }
 0x11c   : > { %v280_v15 = vadd.f32 %v279_v14, %v257_v13 }
 0x11e   : > { %302 = vrot.lane.b32.xlu0 %v280_v15, %s591_s26  ;;  %v406_v16 = vmul.f32 -1.442695, %v280_v15 }
 0x120   : > { %457 = vpow2.f32 %v406_v16 }
 0x126   : > { %v458_v17 = vpop.eup %457 }
 0x127   : > { %v285_v18 = vadd.f32 1.0, %v458_v17 }
 0x129   : > { %459 = vrcp.f32 %v285_v18  ;;  %v297_v24 = vand.u32 2147483648, %v285_v18  ;;  %vm291_vm4 = vweird.f32 %v285_v18  ;;  %v295_v25 = vand.u32 2147483647, %v285_v18 }
 0x12b   : > { %v298_v27 = vor.u32 1.1754944e-38, %v297_v24  ;;  %vm296_vm6 = vcmp.eq.f32.partialorder %v295_v25, 8.507059e+37 }
 0x12f   : > { %v460_v19 = vpop.eup %459 }
 0x130   : > { %v287_v20 = vmul.f32 %v460_v19, %v285_v18  ;;  %vm292_vm3 = vweird.f32 %v460_v19 }
 0x131   : > { %vm293_vm5 = vmor %vm291_vm4, %vm292_vm3 }
 0x132   : > { %v288_v21 = vsub.f32 1.0, %v287_v20 }
 0x134   : > { %v289_v22 = vmul.f32 %v460_v19, %v288_v21 }
 0x136   : > { %v290_v23 = vadd.f32 %v460_v19, %v289_v22 }
 0x138   : > { %v294_v26 = vsel %vm293_vm5, %v460_v19, %v290_v23 }
 0x139   : > { %v299_v29 = vsel %vm296_vm6, %v298_v27, %v294_v26 }
 0x13a   : > { %v312_v34 = vsub.f32 1.0, %v299_v29  ;;  %v318_v37 = vmul.f32 %v299_v29, %v245_v11 }
 0x190   : > { %v303_v28 = vpop.permute.xlu0 %302 }
 0x191   : > { %v305_v30 = vmul.f32 %v303_v28, %v299_v29 }
 0x193   : > { %307 = vrot.lane.b32.xlu1 %v305_v30, %s592_s25 }
 0x205   : > { %v308_v31 = vpop.permute.xlu1 %307 }
 0x206   : > { %v310_v32 = vadd.f32 %v308_v31, %v280_v15 }
 0x208   : > { %461 = vtanh.f32 %v310_v32 }
 0x20e   : > { %v462_v33 = vpop.eup %461 }
 0x20f   : > { %314 = vrot.lane.b32.xlu1 %v462_v33, %s593_s29 }
 0x281   : > { %v315_v35 = vpop.permute.xlu1 %314 }
 0x282   : > { %v317_v36 = vmul.f32 %v315_v35, %v312_v34 }
 0x284   : > { %v319_v38 = vadd.f32 %v318_v37, %v317_v36 }
 0x286   : > { %321 = vrot.lane.b32.xlu2 %v319_v38, %s593_s29 }
 0x2e0   : > { %v322_v39 = vpop.permute.xlu2 %321 }
 0x2e1   : > { %325 = vst.msk [vmem:[#allocation2] sm:$0x1] %vm324_vm7, %v322_v39 }
 0x2e2   : > { %326 = vst.msk [vmem:[%s230_s23] sm:$0x1] %vm324_vm7, %v322_v39 }
 0x2e3 PF: > { %s25_s22 = sadd.s32 1, %s581_s22  }
 0x2e4   : > { %p22_p8 = scmp.ge.s32.totalorder %s25_s22, 10  }
 0x2e6   :  { %24 = sbr.rel (!%p22_p8) target bundleno = 8 (0x8), region = 81 }
 0x2eb   :  { %344 = vsyncpa [#allocation6], 1 }
 0x2ec   :  { %346 = vsyncpa [#allocation6 + $0x1], 1 }
 0x2ed   :  { %347 = vsyncpa [#allocation8], 1 }

</bundles_post_ra>
